<compile_context>
chip_gen: v6e
topology: v6e:2x2x1
jax: 0.10.0
libtpu: 0.0.40
codegen_flags: <defaults>
</compile_context>

<pallas_src>
import functools
import math

import jax
import jax.numpy as jnp
from jax.experimental import pallas as pl
from jax.experimental.pallas import tpu as pltpu


def _pos_emb_kernel(t_ref, tab_ref, o_ref, *, k_pack):
    # t_ref:   (TB, K)          float32 -- K timesteps packed per physical row
    # tab_ref: (3, PC)          float32 -- row0 = freqs (tiled K times),
    #                                      row1 = phase (0 / pi/2, tiled K times),
    #                                      row2 = lane group id (0..K-1) as f32
    # o_ref:   (TB, PC)         PC = K * channels, a multiple of 128 (lane-dense)
    rows, pc = o_ref.shape
    shape = (rows, pc)

    freq = tab_ref[0:1, :]       # (1, PC) -- sublane-broadcast in the mul below
    phase = tab_ref[1:2, :]      # (1, PC)

    t = t_ref[...]               # (rows, K)
    if k_pack == 1:
        # Realistic DDPM widths (C a multiple of 128): no expansion needed.
        t_exp = jnp.broadcast_to(t, shape)                      # lane splat
    else:
        # Expand t along lanes: element [r, k*C + c] needs t[r, k].
        # Pure VPU: start with group 0, then select in groups 1..K-1 using the
        # precomputed f32 group-id row (exact small-integer compares).
        gid = jnp.broadcast_to(tab_ref[2:3, :], shape)          # sublane splat
        t_exp = jnp.broadcast_to(t[:, 0:1], shape)              # lane splat
        for k in range(1, k_pack):
            t_exp = jnp.where(gid == float(k),
                              jnp.broadcast_to(t[:, k : k + 1], shape),
                              t_exp)

    # cos(x) == sin(x + pi/2): single full-lane-width transcendental pass.
    o_ref[...] = jnp.sin(t_exp * freq + phase).astype(o_ref.dtype)


@functools.partial(jax.jit, static_argnames=("channels", "out_dtype"))
def positional_embedding(t, channels, out_dtype=jnp.float32):
    """JAX/Pallas equivalent of PositionalEmbedding(channels).forward(t).

    t: (B,) timesteps (any real dtype). Returns (B, channels) `out_dtype` with
    [:, :C/2] = sin(t * freq) and [:, C/2:] = cos(t * freq), matching
    torch.cat((emb.sin(), emb.cos()), dim=-1). Math is float32 end-to-end.
    """
    channels = int(channels)
    assert channels % 2 == 0 and channels >= 4, "channels must be even and >= 4"
    half = channels // 2
    b = int(t.shape[0])

    # ---- lane packing: K logical rows per physical row, last dim multiple of 128.
    k_pack = 128 // math.gcd(channels, 128)
    packed_c = k_pack * channels                     # lcm(channels, 128)

    # ---- constant table (parameter-free, constant-folded under jit).
    scale = math.log(10000.0) / (half - 1)
    freqs = jnp.exp(jnp.arange(half, dtype=jnp.float32) * -scale)            # (H,)
    freq_row = jnp.concatenate([freqs, freqs])                               # (C,)
    phase_row = jnp.concatenate(
        [jnp.zeros((half,), jnp.float32),
         jnp.full((half,), math.pi / 2.0, dtype=jnp.float32)])               # (C,)
    gid_row = jnp.repeat(jnp.arange(k_pack, dtype=jnp.float32), channels)    # (PC,)
    table = jnp.stack([jnp.tile(freq_row, k_pack),
                       jnp.tile(phase_row, k_pack),
                       gid_row])                                             # (3, PC)

    # ---- batch tiling: byte-budgeted rows (not a fixed cap), >=2 tiles for v7x.
    g = -(-b // k_pack)                              # physical rows needed
    out_itemsize = jnp.dtype(out_dtype).itemsize
    budget = 2 * 1024 * 1024                         # ~2 MiB per output tile
    tb = max(8, (budget // (packed_c * out_itemsize)) // 8 * 8)

    if g <= 8:
        tb = g                                       # single tile; block == full dims
        g_pad = g
    else:
        g8 = ((g + 7) // 8) * 8
        if tb >= g8:
            # Whole batch fits in one tile -> split in two so v7x's second
            # TensorCore gets a grid step (tiles stay multiples of 8).
            tb = max(8, ((g8 // 2 + 7) // 8) * 8)
        tb = min(tb, g8)
        g_pad = ((g + tb - 1) // tb) * tb
    grid = g_pad // tb

    # ---- pack timesteps: t_grouped[r, k] = t[r*K + k] (plain reshape of padded t).
    b_pad = g_pad * k_pack
    t32 = t.astype(jnp.float32).reshape(b)
    if b_pad != b:
        t32 = jnp.pad(t32, (0, b_pad - b))
    t_grouped = t32.reshape(g_pad, k_pack)

    out = pl.pallas_call(
        functools.partial(_pos_emb_kernel, k_pack=k_pack),
        out_shape=jax.ShapeDtypeStruct((g_pad, packed_c), out_dtype),
        grid=(grid,),
        in_specs=[
            pl.BlockSpec((tb, k_pack), lambda i: (i, 0)),
            pl.BlockSpec((3, packed_c), lambda i: (0, 0)),
        ],
        out_specs=pl.BlockSpec((tb, packed_c), lambda i: (i, 0)),
        compiler_params=pltpu.CompilerParams(
            dimension_semantics=("parallel",),       # independent batch tiles
            vmem_limit_bytes=32 * 1024 * 1024,       # covers 2x double-buffered tiles
        ),
    )(t_grouped, table)

    # Free reshape back to logical layout, drop padded rows.
    out = out.reshape(b_pad, channels)
    if b_pad != b:
        out = out[:b]
    return out


def _reference(t, channels):
    # Faithful port of the PyTorch forward (cat(sin, cos)).
    half = channels // 2
    scale = math.log(10000.0) / (half - 1)
    freqs = jnp.exp(jnp.arange(half, dtype=jnp.float32) * -scale)
    emb = t[:, None].astype(jnp.float32) * freqs[None, :]
    return jnp.concatenate([jnp.sin(emb), jnp.cos(emb)], axis=-1)


if __name__ == "__main__":
    key = jax.random.PRNGKey(0)

    # Primary config: channels=32, batch=8 (lane-packed: K=4, packed width 128).
    channels = 32
    batch = 8
    t = jax.random.randint(key, (batch,), 0, 1000).astype(jnp.float32)
    out = jax.block_until_ready(positional_embedding(t, channels))
    ref = _reference(t, channels)
    assert out.shape == (batch, channels)
    # cos via sin(x + pi/2) in fp32: argument-rounding error ~3e-5 for t ~ 1e3.
    assert jnp.allclose(out, ref, atol=5e-4, rtol=1e-5), float(
        jnp.max(jnp.abs(out - ref)))

    # Secondary tiny config exercising batch padding (K=16 > batch).
    channels2, batch2 = 8, 5
    t2 = jax.random.randint(jax.random.PRNGKey(1), (batch2,), 0, 1000).astype(
        jnp.float32)
    out2 = jax.block_until_ready(positional_embedding(t2, channels2))
    ref2 = _reference(t2, channels2)
    assert out2.shape == (batch2, channels2)
    assert jnp.allclose(out2, ref2, atol=5e-4, rtol=1e-5), float(
        jnp.max(jnp.abs(out2 - ref2)))

    print("KERNEL_OK")
</pallas_src>

<mosaic_0001>
module attributes {stable_mosaic.version = 11 : i64} {
  func.func @_pos_emb_kernel(%arg0: i32, %arg1: memref<2x4xf32, #tpu.memory_space<vmem>>, %arg2: memref<3x128xf32, #tpu.memory_space<vmem>>, %arg3: memref<2x128xf32, #tpu.memory_space<vmem>>) attributes {dimension_semantics = [#tpu.dimension_semantics<parallel>], iteration_bounds = array<i64: 1>, scalar_prefetch = 0 : i64, scratch_operands = 0 : i64, tpu.core_type = #tpu.core_type<tc>, window_params = [{transform_indices = @transform_0, window_bounds = array<i64: 2, 4>}, {pipeline_mode = #tpu.pipeline_mode<synchronous>, transform_indices = @transform_1, window_bounds = array<i64: 3, 128>}, {transform_indices = @transform_2, window_bounds = array<i64: 2, 128>}]} {
    %c0 = arith.constant 0 : index
    %c0_0 = arith.constant 0 : index
    %0 = vector.load %arg2[%c0, %c0_0] : memref<3x128xf32, #tpu.memory_space<vmem>>, vector<1x128xf32>
    %c1 = arith.constant 1 : index
    %c0_1 = arith.constant 0 : index
    %1 = vector.load %arg2[%c1, %c0_1] : memref<3x128xf32, #tpu.memory_space<vmem>>, vector<1x128xf32>
    %c0_2 = arith.constant 0 : index
    %c0_3 = arith.constant 0 : index
    %2 = vector.load %arg1[%c0_2, %c0_3] : memref<2x4xf32, #tpu.memory_space<vmem>>, vector<2x4xf32>
    %c2 = arith.constant 2 : index
    %c0_4 = arith.constant 0 : index
    %3 = vector.load %arg2[%c2, %c0_4] : memref<3x128xf32, #tpu.memory_space<vmem>>, vector<1x128xf32>
    %4 = vector.shape_cast %3 : vector<1x128xf32> to vector<1x128xf32>
    %5 = vector.broadcast %4 : vector<1x128xf32> to vector<2x128xf32>
    %6 = vector.extract_strided_slice %2 {offsets = [0, 0], sizes = [2, 1], strides = [1, 1]} : vector<2x4xf32> to vector<2x1xf32>
    %7 = vector.shape_cast %6 : vector<2x1xf32> to vector<2x1xf32>
    %8 = vector.broadcast %7 : vector<2x1xf32> to vector<2x128xf32>
    %cst = arith.constant 1.000000e+00 : f32
    %9 = vector.broadcast %cst : f32 to vector<2x128xf32>
    %10 = arith.cmpf oeq, %5, %9 : vector<2x128xf32>
    %11 = vector.extract_strided_slice %2 {offsets = [0, 1], sizes = [2, 1], strides = [1, 1]} : vector<2x4xf32> to vector<2x1xf32>
    %12 = vector.shape_cast %11 : vector<2x1xf32> to vector<2x1xf32>
    %13 = vector.broadcast %12 : vector<2x1xf32> to vector<2x128xf32>
    %14 = arith.select %10, %13, %8 : vector<2x128xi1>, vector<2x128xf32>
    %cst_5 = arith.constant 2.000000e+00 : f32
    %15 = vector.broadcast %cst_5 : f32 to vector<2x128xf32>
    %16 = arith.cmpf oeq, %5, %15 : vector<2x128xf32>
    %17 = vector.extract_strided_slice %2 {offsets = [0, 2], sizes = [2, 1], strides = [1, 1]} : vector<2x4xf32> to vector<2x1xf32>
    %18 = vector.shape_cast %17 : vector<2x1xf32> to vector<2x1xf32>
    %19 = vector.broadcast %18 : vector<2x1xf32> to vector<2x128xf32>
    %20 = arith.select %16, %19, %14 : vector<2x128xi1>, vector<2x128xf32>
    %cst_6 = arith.constant 3.000000e+00 : f32
    %21 = vector.broadcast %cst_6 : f32 to vector<2x128xf32>
    %22 = arith.cmpf oeq, %5, %21 : vector<2x128xf32>
    %23 = vector.extract_strided_slice %2 {offsets = [0, 3], sizes = [2, 1], strides = [1, 1]} : vector<2x4xf32> to vector<2x1xf32>
    %24 = vector.shape_cast %23 : vector<2x1xf32> to vector<2x1xf32>
    %25 = vector.broadcast %24 : vector<2x1xf32> to vector<2x128xf32>
    %26 = arith.select %22, %25, %20 : vector<2x128xi1>, vector<2x128xf32>
    %27 = vector.broadcast %0 : vector<1x128xf32> to vector<2x128xf32>
    %28 = arith.mulf %26, %27 : vector<2x128xf32>
    %29 = vector.broadcast %1 : vector<1x128xf32> to vector<2x128xf32>
    %30 = arith.addf %28, %29 : vector<2x128xf32>
    %31 = math.sin %30 : vector<2x128xf32>
    %c0_7 = arith.constant 0 : index
    %c0_8 = arith.constant 0 : index
    %32 = vector.load %arg3[%c0_7, %c0_8] : memref<2x128xf32, #tpu.memory_space<vmem>>, vector<2x128xf32>
    tpu.vector_store %arg3[%c0_7, %c0_8], %31 {strides = array<i32>} : memref<2x128xf32, #tpu.memory_space<vmem>>, vector<2x128xf32>,
    return
  }
  func.func @transform_0(%arg0: i32) -> (i32, i32) {
    %c0_i32 = arith.constant 0 : i32
    %c0_i32_0 = arith.constant 0 : i32
    return %arg0, %c0_i32 : i32, i32
  }
  func.func @transform_1(%arg0: i32) -> (i32, i32) {
    %c0_i32 = arith.constant 0 : i32
    %c0_i32_0 = arith.constant 0 : i32
    %c0_i32_1 = arith.constant 0 : i32
    return %c0_i32, %c0_i32_0 : i32, i32
  }
  func.func @transform_2(%arg0: i32) -> (i32, i32) {
    %c0_i32 = arith.constant 0 : i32
    %c0_i32_0 = arith.constant 0 : i32
    return %arg0, %c0_i32 : i32, i32
  }
}

</mosaic_0001>

<bundles_post_ra>
// kernel: tile.12
= control target key start
LH: loop header
LB: loop body
LE: loop exit
PB: predicated region body
PF: predicated region fallthrough
CT: control target
= control target key end

     0   :  { %s22_s0 = inlined_call_operand.vmem [shape: f32[32], index: 0, kind: input, shape index: {}]   ;;  %s23_s1 = inlined_call_operand.vmem [shape: f32[4,32], index: 1, kind: output, shape index: {}]  }
   0x1   :  { %v4_v0 = vld [vmem:[%s22_s0] ss:$0 sm:$0xff] }
   0x2   :  { %5 = vst [vmem:[%s23_s1] sm:$0xf] %v4_v0 }

// kernel: tile.16
= control target key start
LH: loop header
LB: loop body
LE: loop exit
PB: predicated region body
PF: predicated region fallthrough
CT: control target
= control target key end

     0   :  { %vm8_vm0 = vcmask 261120   ;;  %s40_s8 = smov 32   ;;  %s41_s9 = smov 64   ;;  %vm14_vm1 = vcmask 1048320   ;;  %vm20_vm2 = vcmask 785920   ;;  %vm26_vm3 = vcmask 523520   ;;  %s58_s0 = inlined_call_operand.vmem [shape: f32[4,32], index: 0, kind: input, shape index: {}]   ;;  %s59_s1 = inlined_call_operand.vmem [shape: f32[1,128], index: 1, kind: output, shape index: {}]  }
   0x1   :  { %v5_v0 = vld [vmem:[%s58_s0] sm:$0xf]  ;;  %s39_s0 = smov 96  }
   0x2   :  { %6 = vst [vmem:[#allocation1] sm:$0xf] %v5_v0 }
   0x9   :  { %v11_v1 = vld [vmem:[#allocation1 + $0x3] sm:$0x1]   ;;  %v23_v2 = vld [vmem:[#allocation1 + $0x1] sm:$0x1]   ;;  %v7_v3 = vld [vmem:[#allocation1] sm:$0x1]  }
   0xa   :  { %12 = vrot.lane.b32.xlu0 %v11_v1, %s39_s0  ;;  %24 = vrot.lane.b32.xlu1 %v23_v2, %s40_s8  ;;  %v17_v4 = vld [vmem:[#allocation1 + $0x2] sm:$0x1]   ;;  %9 = vst.msk [vmem:[#allocation0] sm:$0x1] %vm8_vm0, %v7_v3  }
   0xe   :  { %18 = vrot.lane.b32.xlu0 %v17_v4, %s41_s9 }
  0x7c   :  { %v13_v5 = vpop.permute.xlu0 %12   ;;  %v25_v6 = vpop.permute.xlu1 %24  }
  0x7d   :  { %15 = vst.msk [vmem:[#allocation0] sm:$0x1] %vm14_vm1, %v13_v5  }
  0x80   :  { %v19_v7 = vpop.permute.xlu0 %18  }
  0x81   :  { %21 = vst.msk [vmem:[#allocation0] sm:$0x1] %vm20_vm2, %v19_v7  }
  0x82   :  { %27 = vst.msk [vmem:[#allocation0] sm:$0x1] %vm26_vm3, %v25_v6  }
  0x89   :  { %v32_v8 = vld [vmem:[#allocation0] sm:$0x1] }
  0x8a   :  { %35 = vst [vmem:[%s59_s1] sm:$0x1] %v32_v8 }

// kernel: positional_embedding.1
= control target key start
LH: loop header
LB: loop body
LE: loop exit
PB: predicated region body
PF: predicated region fallthrough
CT: control target
= control target key end

     0   :  { %v191_v0 = vmov 0   ;;  %v192_v2 = vmov 2   ;;  %v193_v3 = vmov 1   ;;  %v194_v4 = vmov 3   ;;  %s252_s0 = inlined_call_operand.vmem [shape: f32[2,4], index: 0, kind: input, shape index: {}]   ;;  %s253_s1 = inlined_call_operand.vmem [shape: f32[3,128], index: 1, kind: input, shape index: {}]   ;;  %s254_s2 = inlined_call_operand.vmem [shape: f32[2,128], index: 2, kind: output, shape index: {}]  }
   0x1   :  { %182 = vset.pattern.permute.xlu0 %v191_v0  ;;  %v13_v1 = vld [vmem:[%s252_s0] sm:$0x3]  ;;  %184 = vset.pattern.permute.xlu1 %v192_v2  ;;  %v161_v7 = vld [vmem:[%s253_s1 + $0x2] ss:$0 sm:$0xff]  ;;  %v195_v27 = vmov 683565275  }
   0x2   :  { %21 = vperm.xlu0 %182, %v13_v1   ;;  %32 = vperm.xlu1 %184, %v13_v1   ;;  %vm24_vm0 = vcmp.eq.f32.partialorder %v161_v7, 1.0  ;;  %vm30_vm1 = vcmp.eq.f32.partialorder %v161_v7, 2.0  ;;  %vm36_vm2 = vcmp.eq.f32.partialorder %v161_v7, 3.0  ;;  %v162_v11 = vld [vmem:[%s253_s1] ss:$0 sm:$0xff] }
   0x3   :  { %v163_v13 = vld [vmem:[%s253_s1 + $0x1] ss:$0 sm:$0xff]  ;;  %v196_v29 = vmov 2475754826   ;;  %v197_v32 = vmov 2131351028  }
   0x4   :  { %v198_v35 = vmov 2102212464   ;;  %v199_v38 = vmov 920167782   ;;  %v200_v41 = vmov 1326507024  }
   0x6   :  { %183 = vset.pattern.permute.xlu0 %v193_v3  ;;  %185 = vset.pattern.permute.xlu1 %v194_v4 }
   0x7   :  { %26 = vperm.xlu0 %183, %v13_v1   ;;  %38 = vperm.xlu1 %185, %v13_v1  }
   0xb   :  { %186 = vset.pattern.permute.xlu0 %v194_v4 }
  0x7d   :  { %v22_v5 = vpop.permute.xlu0 %21  ;;  %v33_v6 = vpop.permute.xlu1 %32 }
  0x82   :  { %v27_v8 = vpop.permute.xlu0 %26  ;;  %v39_v9 = vpop.permute.xlu1 %38 }
  0x83   :  { %v29_v10 = vsel %vm24_vm0, %v27_v8, %v22_v5 }
  0x84   :  { %v35_v12 = vsel %vm30_vm1, %v33_v6, %v29_v10 }
  0x85   :  { %v41_v14 = vsel %vm36_vm2, %v39_v9, %v35_v12 }
  0x86   :  { %v46_v15 = vmul.f32 %v162_v11, %v41_v14 }
  0x88   :  { %v228_v16 = vadd.f32 %v163_v13, %v46_v15 }
  0x8a   :  { %v55_v17 = vand.u32 2139095040, %v228_v16  ;;  %v52_v21 = vand.u32 2147483647, %v228_v16  ;;  %vm54_vm10 = vcmp.lt.s32.totalorder %v228_v16, 0  ;;  %vm144_vm15 = vweird.f32 %v228_v16 }
  0x8c   :  { %v56_v18 = vshrl.u32 %v55_v17, 23  ;;  %v59_v24 = vand.u32 8388607, %v52_v21  ;;  %vm53_vm11 = vcmp.le.f32.partialorder %v52_v21, 0.7853982 }
  0x8e   :  { %v164_v19 = vadd.s32 4294967169, %v56_v18  ;;  %v60_v43 = vor.u32 8388608, %v59_v24 }
  0x90   :  { %v62_v20 = vadd.s32 1, %v164_v19  ;;  %v100_v57 = vshll.u32 %v60_v43, 8 }
  0x92   :  { %vm63_vm3 = vcmp.gt.s32.totalorder %v62_v20, 0 }
  0x93   :  { %v64_v22 = vsel %vm63_vm3, %v62_v20, 0 }
  0x94   :  { %v66_v23 = vand.u32 31, %v64_v22  ;;  %v65_v26 = vshrl.u32 %v64_v22, 5 }
  0x96   :  { %v67_v25 = vsub.s32 32, %v66_v23  ;;  %v69_v28 = vshll.u32 %v195_v27, %v66_v23  ;;  %v72_v30 = vshll.u32 %v196_v29, %v66_v23  ;;  %v75_v34 = vshll.u32 %v197_v32, %v66_v23 }
  0x97   :  { %v78_v37 = vshll.u32 %v198_v35, %v66_v23  ;;  %v81_v40 = vshll.u32 %v199_v38, %v66_v23  ;;  %vm84_vm4 = vcmp.lt.s32.totalorder %v65_v26, 1  ;;  %vm87_vm5 = vcmp.lt.s32.totalorder %v65_v26, 4 }
  0x98   :  { %v70_v31 = vshrl.u32 %v196_v29, %v67_v25  ;;  %v73_v33 = vshrl.u32 %v197_v32, %v67_v25  ;;  %v76_v36 = vshrl.u32 %v198_v35, %v67_v25  ;;  %v79_v39 = vshrl.u32 %v199_v38, %v67_v25 }
  0x99   :  { %v82_v42 = vshrl.u32 %v200_v41, %v67_v25  ;;  %v68_v52 = vshrl.u32 %v195_v27, %v67_v25  ;;  %vm86_vm6 = vcmp.lt.s32.totalorder %v65_v26, 3  ;;  %vm85_vm7 = vcmp.lt.s32.totalorder %v65_v26, 2 }
  0x9a   :  { %v71_v44 = vor.u32 %v70_v31, %v69_v28  ;;  %v74_v45 = vor.u32 %v73_v33, %v72_v30  ;;  %v77_v46 = vor.u32 %v76_v36, %v75_v34  ;;  %v80_v47 = vor.u32 %v79_v39, %v78_v37 }
  0x9b   :  { %v83_v48 = vor.u32 %v82_v42, %v81_v40 }
  0x9c   :  { %v89_v49 = vsel %vm87_vm5, %v77_v46, 2102212464  ;;  %v92_v50 = vsel %vm84_vm4, %v71_v44, %v74_v45  ;;  %v96_v51 = vsel %vm84_vm4, %v74_v45, %v77_v46  ;;  %v93_v53 = vsel %vm87_vm5, %v80_v47, 920167782 }
  0x9d   :  { %v97_v54 = vsel %vm87_vm5, %v83_v48, 1326507024  ;;  %v94_v55 = vsel %vm86_vm6, %v77_v46, %v93_v53  ;;  %v88_v58 = vsel %vm84_vm4, %v68_v52, %v71_v44  ;;  %v90_v59 = vsel %vm86_vm6, %v74_v45, %v89_v49 }
  0x9e   :  { %v98_v56 = vsel %vm86_vm6, %v80_v47, %v97_v54  ;;  %v95_v60 = vsel %vm85_vm7, %v92_v50, %v94_v55  ;;  %v91_v2 = vsel %vm85_vm7, %v88_v58, %v90_v59 }
  0x9f   :  { %v99_v61 = vsel %vm85_vm7, %v96_v51, %v98_v56  ;;  %v237_v0 = vmul.u32.u64.low %v100_v57, %v95_v60  ;;  %v238_v1 = vmul.u32.u64.high %v100_v57, %v95_v60, %v237_v0  ;;  %v107_v4 = vmul.u32 %v100_v57, %v91_v2 }
  0xa0   :  { %v234_v62 = vmul.u32.u64.low %v100_v57, %v99_v61  ;;  %v235_v63 = vmul.u32.u64.high %v100_v57, %v99_v61, %v234_v62 }
  0xa1   :  { %v110_v3 = vadd.s32 1, %v238_v1 }
  0xa2   :  { %vm109_vm8 = vc.u32 %v235_v63, %v237_v0  ;;  %v108_v17 = vadd.s32 %v237_v0, %v235_v63 }
  0xa3   :  { %v111_v5 = vsel %vm109_vm8, %v110_v3, %v238_v1 }
  0xa4   :  { %v112_v6 = vadd.s32 %v111_v5, %v107_v4 }
  0xa6   :  { %v113_v7 = vadd.s32 536870912, %v112_v6 }
  0xa8   :  { %v114_v8 = vshrl.u32 %v113_v7, 30 }
  0xaa   :  { %v115_v9 = vshll.u32 %v114_v8, 30  ;;  %v138_v31 = vsub.s32 4, %v114_v8 }
  0xac   :  { %v116_v10 = vsub.s32 %v112_v6, %v115_v9  ;;  %v139_v34 = vsel %vm54_vm10, %v138_v31, %v114_v8 }
  0xad   :  { %v141_v35 = vsel %vm53_vm11, 0, %v139_v34 }
  0xae   :  { %v118_v11 = vsub.s32 0, %v116_v10  ;;  %v145_v36 = vadd.s32 3, %v141_v35 }
  0xb0   :  { %v165_v12 = vmin.u32 %v118_v11, %v116_v10  ;;  %v146_v37 = vand.u32 3, %v145_v36 }
  0xb2   :  { %v120_v13 = vclz %v165_v12  ;;  %vm151_vm12 = vcmp.eq.s32.totalorder %v146_v37, 2  ;;  %vm148_vm13 = vcmp.eq.s32.totalorder %v146_v37, 0  ;;  %vm147_vm14 = vcmp.lt.s32.totalorder %v146_v37, 2 }
  0xb4   :  { %v166_v14 = vadd.s32 4294967294, %v120_v13 }
  0xb6   :  { %vm167_vm9 = vcmp.lt.s32.totalorder %v166_v14, 0 }
  0xb7   :  { %v123_v15 = vsel %vm167_vm9, 0, %v166_v14 }
  0xb8   :  { %v124_v18 = vsub.s32 32, %v123_v15  ;;  %v128_v19 = vsub.s32 4294967266, %v123_v15  ;;  %v125_v20 = vshll.u32 %v116_v10, %v123_v15 }
  0xba   :  { %v126_v22 = vshrl.u32 %v108_v17, %v124_v18  ;;  %v129_v23 = vadd.s32 127, %v128_v19 }
  0xbc   :  { %v127_v24 = vor.u32 %v126_v22, %v125_v20  ;;  %v130_v25 = vshll.u32 %v129_v23, 23 }
  0xbe   :  { %v131_v26 = vor.u32 4788187, %v130_v25  ;;  %v134_v28 = vcvt.s32.f32 %v127_v24 }
  0xc0   :  { %v132_v27 = vand.u32 2147483647, %v131_v26 }
  0xc2   :  { %v135_v29 = vmul.f32 %v134_v28, %v132_v27 }
  0xc4   :  { %v136_v30 = vxor.u32 2147483648, %v135_v29 }
  0xc6   :  { %v137_v32 = vsel %vm54_vm10, %v136_v30, %v135_v29 }
  0xc7   :  { %v140_v33 = vsel %vm53_vm11, %v228_v16, %v137_v32 }
  0xc8   :  { %187 = vcosq.f32 %v140_v33 }
  0xc9   :  { %189 = vsinq.f32 %v140_v33 }
  0xd5   :  { %v188_v38 = vpop.eup %187 }
  0xd6   :  { %v190_v39 = vpop.eup %189  ;;  %v152_v40 = vxor.u32 2147483648, %v188_v38 }
  0xd7   :  { %v149_v41 = vxor.u32 2147483648, %v190_v39 }
  0xd8   :  { %v153_v42 = vsel %vm151_vm12, %v152_v40, %v190_v39 }
  0xd9   :  { %v150_v43 = vsel %vm148_vm13, %v188_v38, %v149_v41 }
  0xda   :  { %v154_v21 = vsel %vm147_vm14, %v150_v43, %v153_v42 }
  0xdb   :  { %v155_v44 = vsel %vm144_vm15, nan, %v154_v21 }
  0xdc   :  { %156 = vst [vmem:[%s254_s2] sm:$0x3] %v155_v44 }

</bundles_post_ra>
